<compile_context>
chip_gen: v5e
topology: v5e:2x2
jax: 0.10.0
libtpu: 0.0.40
codegen_flags: <defaults>
</compile_context>

<pallas_src>
import functools

import jax
import jax.numpy as jnp
from jax import lax
from jax.experimental import pallas as pl
from jax.experimental.pallas import tpu as pltpu


# ------------------------------ helpers ------------------------------------ #

@functools.lru_cache(maxsize=None)
def _vmem_limit_bytes():
    """Per-generation scoped-VMEM budget with headroom (v7x has only 64 MiB/TC)."""
    cap = 128 * 1024 * 1024
    try:
        cap = int(getattr(pltpu.get_tpu_info(), "vmem_capacity_bytes", cap))
    except Exception:
        pass
    return int(min(cap * 3 // 4, 96 * 1024 * 1024))   # v7x -> 48 MiB, v5e/v6e -> 96 MiB


def _round_up(x, m):
    return ((x + m - 1) // m) * m


def _pad_seq(t):
    """Pad seq length to a 128-multiple so real q/KV tiling is possible
    (Whisper T=1500 -> 1536).  Short sequences stay a single full block."""
    return t if t <= 128 else _round_up(t, 128)


def _pick_block(dim, target, align):
    """Largest block <= target that is either the full dim or an `align`-multiple divisor."""
    if dim <= target:
        return dim
    cand = (target // align) * align
    while cand >= align:
        if dim % cand == 0:
            return cand
        cand -= align
    return dim


def _pick_head_group(n_head, d):
    """Heads packed per attention block so the last block dim (hb*d) is lane-dense."""
    hb = 1
    while (hb * d) % 128 != 0 and hb < n_head and n_head % (hb * 2) == 0:
        hb *= 2
    if (hb * d) % 128 != 0:
        hb = n_head  # fallback: block spans the full fused width, sliced in-kernel
    return hb


# ------------------------- tiled linear (GEMM + bias) ----------------------- #

def _matmul_bias_kernel(x_ref, w_ref, b_ref, o_ref, acc_ref):
    @pl.when(pl.program_id(2) == 0)
    def _():
        acc_ref[...] = jnp.zeros(acc_ref.shape, acc_ref.dtype)

    acc_ref[...] += jnp.dot(x_ref[...], w_ref[...],
                            preferred_element_type=jnp.float32)

    @pl.when(pl.program_id(2) == pl.num_programs(2) - 1)
    def _():
        o_ref[...] = (acc_ref[...] + b_ref[...].astype(jnp.float32)).astype(o_ref.dtype)


def pallas_linear(x2d, w_t, bias, *, out_dtype=None,
                  tm_target=256, tn_target=256, tk_target=512):
    """y = x2d @ w_t + bias.  x2d: (M, K), w_t: (K, N) pre-transposed, bias: (N,) f32."""
    M, K = x2d.shape
    K2, N = w_t.shape
    assert K == K2, (K, K2)
    out_dtype = out_dtype or x2d.dtype

    tm = _pick_block(M, tm_target, 8)
    tn = _pick_block(N, tn_target, 128)
    tk = _pick_block(K, tk_target, 128)
    grid = (M // tm, N // tn, K // tk)

    itemsize = x2d.dtype.itemsize
    cost = pl.CostEstimate(
        flops=2 * M * N * K, transcendentals=0,
        bytes_accessed=(M * K + K * N + M * N) * itemsize)

    return pl.pallas_call(
        _matmul_bias_kernel,
        out_shape=jax.ShapeDtypeStruct((M, N), out_dtype),
        grid_spec=pltpu.PrefetchScalarGridSpec(
            num_scalar_prefetch=0,
            grid=grid,
            in_specs=[pl.BlockSpec((tm, tk), lambda i, j, k: (i, k)),
                      pl.BlockSpec((tk, tn), lambda i, j, k: (k, j)),
                      pl.BlockSpec((1, tn), lambda i, j, k: (0, j))],
            out_specs=pl.BlockSpec((tm, tn), lambda i, j, k: (i, j)),
            scratch_shapes=[pltpu.VMEM((tm, tn), jnp.float32)]),
        compiler_params=pltpu.CompilerParams(
            dimension_semantics=("parallel", "parallel", "arbitrary"),
            vmem_limit_bytes=_vmem_limit_bytes()),
        cost_estimate=cost,
    )(x2d, w_t, bias.reshape(1, N))


# ---------------------- flash-style multi-head attention -------------------- #

def _flash_attn_kernel(*refs, hb, d, causal, has_mask, split_kv, chan_off,
                       t_real, mm_dtype):
    it = iter(refs)
    q_ref = next(it)
    if split_kv:
        k_ref, v_ref = next(it), next(it)
    else:
        k_ref = v_ref = next(it)        # fallback: K and V share one fused stream
    mask_ref = next(it) if has_mask else None
    o_ref = next(it)
    m_sc, l_sc, acc_sc = next(it), next(it), next(it)

    tq = o_ref.shape[1]
    t_kv = k_ref.shape[1]
    q_idx = pl.program_id(2)
    kv_idx = pl.program_id(3)

    @pl.when(kv_idx == 0)
    def _init():
        m_sc[...] = jnp.full(m_sc.shape, -jnp.inf, m_sc.dtype)
        l_sc[...] = jnp.zeros(l_sc.shape, l_sc.dtype)
        acc_sc[...] = jnp.zeros(acc_sc.shape, acc_sc.dtype)

    def _body():
        if chan_off is None:
            qb, kb, vb = q_ref[0], k_ref[0], v_ref[0]
        else:   # non-lane-aligned fallback: slice channels out of the fused block
            qs, ks, vs = chan_off
            hbd = hb * d
            qb = q_ref[0, :, qs:qs + hbd]
            kb = k_ref[0, :, ks:ks + hbd]
            vb = v_ref[0, :, vs:vs + hbd]

        # softmax scale already folded into Wq/bq at prepare time
        q = qb.astype(mm_dtype).reshape(tq, hb, d)
        k = kb.astype(mm_dtype).reshape(t_kv, hb, d)
        v = vb.astype(mm_dtype).reshape(t_kv, hb, d)

        # scores: contract on d, batch over packed heads -> (hb, tq, t_kv); f32 acc
        s = lax.dot_general(q, k, dimension_numbers=(((2,), (2,)), ((1,), (1,))),
                            preferred_element_type=jnp.float32)

        if has_mask:
            s = s + mask_ref[...][None, :, :]

        keep = None
        if causal:
            qi = lax.broadcasted_iota(jnp.int32, (tq, t_kv), 0) + q_idx * tq
            ki = lax.broadcasted_iota(jnp.int32, (tq, t_kv), 1) + kv_idx * t_kv
            keep = ki <= qi
        if t_real is not None:      # mask keys that only exist because of padding
            ki = lax.broadcasted_iota(jnp.int32, (tq, t_kv), 1) + kv_idx * t_kv
            kv_ok = ki < t_real
            keep = kv_ok if keep is None else jnp.logical_and(keep, kv_ok)
        if keep is not None:
            s = jnp.where(keep[None, :, :], s, -jnp.inf)

        # online softmax over the (innermost) kv grid axis — all in f32
        m_prev = m_sc[...]                                        # (hb, tq, 1)
        m_new = jnp.maximum(m_prev, jnp.max(s, axis=-1, keepdims=True))
        m_safe = jnp.maximum(m_new, -1e30)        # fully-masked rows: no -inf-(-inf) NaN
        alpha = jnp.exp(m_prev - m_safe)
        p = jnp.exp(s - m_safe)
        l_sc[...] = alpha * l_sc[...] + jnp.sum(p, axis=-1, keepdims=True)
        pv = lax.dot_general(p.astype(mm_dtype), v,
                             dimension_numbers=(((2,), (0,)), ((0,), (1,))),
                             preferred_element_type=jnp.float32)  # (hb, tq, d)
        acc_sc[...] = alpha * acc_sc[...] + pv
        m_sc[...] = m_new

    if causal:
        # skip KV blocks entirely in the causal future of this query tile (~2x saved)
        pl.when(kv_idx * t_kv < (q_idx + 1) * tq)(_body)
    else:
        _body()

    @pl.when(kv_idx == pl.num_programs(3) - 1)
    def _finalize():
        l = l_sc[...]
        l = jnp.where(l > 0.0, l, 1.0)             # fully-masked rows -> 0, not NaN
        inv_l = pl.reciprocal(l, approx=True)      # EUP slot
        inv_l = inv_l * (2.0 - l * inv_l)          # one Newton step -> ~exact f32
        o = acc_sc[...] * inv_l                    # (hb, tq, d)
        # single lane-dense store in merged-head layout
        o_ref[0] = jnp.transpose(o, (1, 0, 2)).reshape(tq, hb * d).astype(o_ref.dtype)


def pallas_mha_attention(qkv2d, B, T, n_state, n_head, *, mask=None, causal=False,
                         t_real=None, out_dtype=None, tq_target=256, tkv_target=512):
    """qkv2d: (B*T, 3*n_state) fused projection output (T already padded).
    `mask`, if given, must be an additive (T, T) f32 tensor (use -inf, not large
    finite negatives, so fully-masked stays fully-masked).  Returns (B, T, n_state)."""
    d = n_state // n_head
    hb = _pick_head_group(n_head, d)
    hblk = n_head // hb
    fused = (hb * d) % 128 == 0
    out_dtype = out_dtype or qkv2d.dtype

    # query/KV tiles: 128-aligned when T was padded, else one full block
    tq = _pick_block(T, tq_target, 128)
    t_kv = _pick_block(T, tkv_target, 128)
    nq, nkv = T // tq, T // t_kv

    qkv3 = qkv2d.reshape(B, T, 3 * n_state)
    if fused:
        # carve q/k/v head groups straight out of the fused projection output
        operands = [qkv3, qkv3, qkv3]
        in_specs = [
            pl.BlockSpec((1, tq, hb * d), lambda b, h, q, kv: (b, q, h)),
            pl.BlockSpec((1, t_kv, hb * d), lambda b, h, q, kv, o=hblk: (b, kv, h + o)),
            pl.BlockSpec((1, t_kv, hb * d), lambda b, h, q, kv, o=2 * hblk: (b, kv, h + o)),
        ]
        split_kv, chan_off = True, None
    else:
        # hb*d not a 128-multiple: blocks span the full fused width and channels are
        # sliced in-kernel (no host-side q/k/v copies, single shared K/V DMA stream)
        operands = [qkv3, qkv3]
        in_specs = [
            pl.BlockSpec((1, tq, 3 * n_state), lambda b, h, q, kv: (b, q, 0)),
            pl.BlockSpec((1, t_kv, 3 * n_state), lambda b, h, q, kv: (b, kv, 0)),
        ]
        split_kv, chan_off = False, (0, n_state, 2 * n_state)

    if mask is not None:
        operands.append(mask)
        in_specs.append(pl.BlockSpec((tq, t_kv), lambda b, h, q, kv: (q, kv)))

    kernel = functools.partial(
        _flash_attn_kernel, hb=hb, d=d, causal=causal, has_mask=mask is not None,
        split_kv=split_kv, chan_off=chan_off, t_real=t_real, mm_dtype=qkv2d.dtype)

    itemsize = qkv2d.dtype.itemsize
    cost = pl.CostEstimate(
        flops=4 * B * n_head * T * T * d,
        transcendentals=B * n_head * T * T,
        bytes_accessed=4 * B * T * n_state * itemsize)

    # TODO(synk): on v5e/v6e, if the K/V DMA is exposed, bump those BlockSpecs to
    # pipeline_mode=pl.Buffered(3) (VMEM headroom exists there, not on v7x).
    return pl.pallas_call(
        kernel,
        out_shape=jax.ShapeDtypeStruct((B, T, n_state), out_dtype),
        grid_spec=pltpu.PrefetchScalarGridSpec(
            num_scalar_prefetch=0,
            grid=(B, hblk, nq, nkv),
            in_specs=in_specs,
            out_specs=pl.BlockSpec((1, tq, hb * d), lambda b, h, q, kv: (b, q, h)),
            scratch_shapes=[pltpu.VMEM((hb, tq, 1), jnp.float32),   # running max
                            pltpu.VMEM((hb, tq, 1), jnp.float32),   # running sum
                            pltpu.VMEM((hb, tq, d), jnp.float32)]), # output acc
        compiler_params=pltpu.CompilerParams(
            dimension_semantics=("parallel", "parallel", "parallel", "arbitrary"),
            vmem_limit_bytes=_vmem_limit_bytes()),
        cost_estimate=cost,
    )(*operands)


# ----------------------------- module wrapper ------------------------------- #

def init_mha_params(key, n_state):
    ks = jax.random.split(key, 6)
    s = 0.02
    return {
        "wq": s * jax.random.normal(ks[0], (n_state, n_state), jnp.float32),
        "bq": s * jax.random.normal(ks[1], (n_state,), jnp.float32),
        "wk": s * jax.random.normal(ks[2], (n_state, n_state), jnp.float32),
        "wv": s * jax.random.normal(ks[3], (n_state, n_state), jnp.float32),
        "bv": s * jax.random.normal(ks[4], (n_state,), jnp.float32),
        "wo": s * jax.random.normal(ks[5], (n_state, n_state), jnp.float32),
        "bo": jnp.zeros((n_state,), jnp.float32),
    }


def prepare_mha_params(params, n_head, compute_dtype=jnp.bfloat16):
    """One-time preprocessing: fuse Q|K|V into one pre-transposed weight, fold the
    softmax scale (d**-0.5) into Wq/bq, and cast weights to the MXU compute dtype
    (bf16 by default; accumulation is always f32 in-kernel)."""
    n_state = params["wq"].shape[0]
    d = n_state // n_head
    scale = float(d) ** (-0.5)          # (d**-0.25 on q) * (d**-0.25 on k)
    wdt = compute_dtype or jnp.float32
    w_qkv_t = jnp.concatenate(
        [(params["wq"] * scale).T, params["wk"].T, params["wv"].T], axis=1)   # (K, 3N)
    b_qkv = jnp.concatenate(
        [params["bq"] * scale, jnp.zeros((n_state,), jnp.float32), params["bv"]])
    return {
        "w_qkv_t": w_qkv_t.astype(wdt),
        "b_qkv": b_qkv.astype(jnp.float32),          # bias added in the f32 accumulator
        "wo_t": params["wo"].T.astype(wdt),
        "bo": params["bo"].astype(jnp.float32),
        "compute_dtype": wdt,
    }


def multi_head_attention(prep, x, n_head, mask=None, causal=False,
                         tq_target=256, tkv_target=512):
    """Self-attention forward (PyTorch MultiHeadAttention.forward with xa=None).
    `causal=True` builds the mask in-kernel (no (T,T) mask DMA); `mask` may also be
    an explicit additive (n_ctx, n_ctx) tensor — pass it as f32 with -inf entries."""
    B, T, n_state = x.shape
    in_dtype = x.dtype
    cdt = prep["compute_dtype"]

    # pad T so attention gets real 128-aligned q/KV tiles and the GEMMs an aligned M;
    # padded keys are masked in-kernel, padded rows are sliced off at the end
    T_pad = _pad_seq(T)
    if T_pad != T:
        x = jnp.pad(x, ((0, 0), (0, T_pad - T), (0, 0)))

    x2d = x.reshape(B * T_pad, n_state).astype(cdt)

    # fused Q|K|V projection; intermediates stay in the compute dtype end-to-end
    qkv2d = pallas_linear(x2d, prep["w_qkv_t"], prep["b_qkv"], out_dtype=cdt)

    mask_p = None
    if mask is not None:
        mask_p = mask[:T, :T].astype(jnp.float32)
        if T_pad != T:
            mask_p = jnp.pad(mask_p, ((0, T_pad - T), (0, T_pad - T)))

    att = pallas_mha_attention(
        qkv2d, B, T_pad, n_state, n_head, mask=mask_p, causal=causal,
        t_real=(T if T_pad != T else None), out_dtype=cdt,
        tq_target=tq_target, tkv_target=tkv_target)

    out2d = pallas_linear(att.reshape(B * T_pad, n_state), prep["wo_t"], prep["bo"],
                          out_dtype=in_dtype)
    out = out2d.reshape(B, T_pad, n_state)
    if T_pad != T:
        out = out[:, :T, :]
    return out
    # TODO(synk): cross-attention (xa) and the kv_cache dict lookup are host-side
    # control flow in the PyTorch module; only the self-attention path is wired here.


# -------------------------------- reference --------------------------------- #

def reference_mha(params, x, n_head, mask=None):
    B, T, n_state = x.shape
    d = n_state // n_head
    scale = float(d) ** (-0.25)
    q = x @ params["wq"].T + params["bq"]
    k = x @ params["wk"].T
    v = x @ params["wv"].T + params["bv"]
    qh = q.reshape(B, T, n_head, d).transpose(0, 2, 1, 3) * scale
    kh = k.reshape(B, T, n_head, d).transpose(0, 2, 3, 1) * scale
    vh = v.reshape(B, T, n_head, d).transpose(0, 2, 1, 3)
    qk = qh @ kh
    if mask is not None:
        qk = qk + mask[:T, :T]
    w = jax.nn.softmax(qk.astype(jnp.float32), axis=-1).astype(q.dtype)
    wv = (w @ vh).transpose(0, 2, 1, 3).reshape(B, T, n_state)
    return wv @ params["wo"].T + params["bo"]


# ---------------------------------- main ------------------------------------ #

if __name__ == "__main__":
    key = jax.random.PRNGKey(0)
    kp, kx, kx2 = jax.random.split(key, 3)

    # Whisper-like head dim: d = n_state // n_head = 64 -> 2 heads packed per block
    n_state, n_head = 128, 2
    params = init_mha_params(kp, n_state)
    prep_bf16 = prepare_mha_params(params, n_head, compute_dtype=jnp.bfloat16)
    prep_f32 = prepare_mha_params(params, n_head, compute_dtype=None)

    def check(name, got, ref, rtol, atol):
        assert got.shape == ref.shape, (name, got.shape, ref.shape)
        assert jnp.allclose(got, ref, rtol=rtol, atol=atol), f"{name} mismatch"

    # ---- Test 1: small unpadded shapes (single q/kv block) ----
    B, T = 2, 8
    x = jax.random.normal(kx, (B, T, n_state), jnp.float32)
    causal_mask = jnp.triu(jnp.full((T, T), -jnp.inf, jnp.float32), k=1)
    ref_causal = reference_mha(params, x, n_head, mask=causal_mask)
    ref_nomask = reference_mha(params, x, n_head, mask=None)

    # f32 compute path: tight check against the PyTorch-equivalent reference
    out_f32 = jax.block_until_ready(
        multi_head_attention(prep_f32, x, n_head, causal=True))
    check("f32 causal", out_f32, ref_causal, 5e-3, 5e-4)

    # default bf16-MXU / f32-accumulate path
    out_causal = jax.block_until_ready(
        multi_head_attention(prep_bf16, x, n_head, causal=True))
    out_masked = jax.block_until_ready(
        multi_head_attention(prep_bf16, x, n_head, mask=causal_mask))
    out_nomask = jax.block_until_ready(
        multi_head_attention(prep_bf16, x, n_head))
    check("bf16 causal", out_causal, ref_causal, 8e-2, 8e-3)
    check("bf16 explicit mask", out_masked, ref_causal, 8e-2, 8e-3)
    check("bf16 no-mask", out_nomask, ref_nomask, 8e-2, 8e-3)

    # ---- Test 2: padded + tiled path (T=200 -> 256, tq=tkv=128 -> 2x2 blocks,
    #              online softmax across KV blocks, causal block skipping) ----
    B2, T2 = 1, 200
    x2 = jax.random.normal(kx2, (B2, T2, n_state), jnp.float32)
    cm2 = jnp.triu(jnp.full((T2, T2), -jnp.inf, jnp.float32), k=1)
    ref2c = reference_mha(params, x2, n_head, mask=cm2)
    ref2n = reference_mha(params, x2, n_head, mask=None)

    out2c_f32 = jax.block_until_ready(
        multi_head_attention(prep_f32, x2, n_head, causal=True,
                             tq_target=128, tkv_target=128))
    check("f32 padded/tiled causal", out2c_f32, ref2c, 5e-3, 5e-4)

    out2c = jax.block_until_ready(
        multi_head_attention(prep_bf16, x2, n_head, causal=True,
                             tq_target=128, tkv_target=128))
    out2m = jax.block_until_ready(
        multi_head_attention(prep_bf16, x2, n_head, mask=cm2,
                             tq_target=128, tkv_target=128))
    out2n = jax.block_until_ready(
        multi_head_attention(prep_bf16, x2, n_head,
                             tq_target=128, tkv_target=128))
    check("bf16 padded/tiled causal", out2c, ref2c, 8e-2, 8e-3)
    check("bf16 padded/tiled mask", out2m, ref2c, 8e-2, 8e-3)
    check("bf16 padded/tiled no-mask", out2n, ref2n, 8e-2, 8e-3)

    print("KERNEL_OK")
</pallas_src>

<mosaic_0001>
module attributes {stable_mosaic.version = 11 : i64} {
  func.func @_matmul_bias_kernel(%arg0: i32, %arg1: i32, %arg2: i32, %arg3: memref<16x128xf32, #tpu.memory_space<vmem>>, %arg4: memref<128x128xf32, #tpu.memory_space<vmem>>, %arg5: memref<1x128xf32, #tpu.memory_space<vmem>>, %arg6: memref<16x128xf32, #tpu.memory_space<vmem>>, %arg7: memref<16x128xf32, #tpu.memory_space<vmem>>) attributes {dimension_semantics = [#tpu.dimension_semantics<parallel>, #tpu.dimension_semantics<parallel>, #tpu.dimension_semantics<arbitrary>], iteration_bounds = array<i64: 1, 3, 1>, scalar_prefetch = 0 : i64, scratch_operands = 1 : i64, tpu.core_type = #tpu.core_type<tc>, window_params = [{transform_indices = @transform_0, window_bounds = array<i64: 16, 128>}, {transform_indices = @transform_1, window_bounds = array<i64: 128, 128>}, {transform_indices = @transform_2, window_bounds = array<i64: 1, 128>}, {transform_indices = @transform_3, window_bounds = array<i64: 16, 128>}]} {
    %c0_i32 = arith.constant 0 : i32
    %0 = arith.cmpi eq, %arg2, %c0_i32 : i32
    %1 = arith.extui %0 : i1 to i32
    %c0_i32_0 = arith.constant 0 : i32
    %2 = arith.cmpi ne, %1, %c0_i32_0 : i32
    scf.if %2 {
      %cst_10 = arith.constant 0.000000e+00 : f32
      %12 = vector.broadcast %cst_10 : f32 to vector<16x128xf32>
      %c0_11 = arith.constant 0 : index
      %c0_12 = arith.constant 0 : index
      %13 = vector.load %arg7[%c0_11, %c0_12] : memref<16x128xf32, #tpu.memory_space<vmem>>, vector<16x128xf32>
      tpu.vector_store %arg7[%c0_11, %c0_12], %12 {strides = array<i32>} : memref<16x128xf32, #tpu.memory_space<vmem>>, vector<16x128xf32>,
    } else {
    }
    %c0 = arith.constant 0 : index
    %c0_1 = arith.constant 0 : index
    %3 = vector.load %arg7[%c0, %c0_1] : memref<16x128xf32, #tpu.memory_space<vmem>>, vector<16x128xf32>
    %c0_2 = arith.constant 0 : index
    %c0_3 = arith.constant 0 : index
    %4 = vector.load %arg3[%c0_2, %c0_3] : memref<16x128xf32, #tpu.memory_space<vmem>>, vector<16x128xf32>
    %c0_4 = arith.constant 0 : index
    %c0_5 = arith.constant 0 : index
    %5 = vector.load %arg4[%c0_4, %c0_5] : memref<128x128xf32, #tpu.memory_space<vmem>>, vector<128x128xf32>
    %cst = arith.constant dense<0.000000e+00> : vector<16x128xf32>
    %6 = tpu.matmul %4, %5, %cst {dimension_numbers = #tpu.dot_dimension_numbers<[1], [0], [0], [1], [0, 0, 1, 1], [], []>} : vector<16x128xf32>, vector<128x128xf32>, vector<16x128xf32> -> vector<16x128xf32>
    %7 = arith.addf %3, %6 : vector<16x128xf32>
    %c0_6 = arith.constant 0 : index
    %c0_7 = arith.constant 0 : index
    %8 = vector.load %arg7[%c0_6, %c0_7] : memref<16x128xf32, #tpu.memory_space<vmem>>, vector<16x128xf32>
    tpu.vector_store %arg7[%c0_6, %c0_7], %7 {strides = array<i32>} : memref<16x128xf32, #tpu.memory_space<vmem>>, vector<16x128xf32>,
    %c0_i32_8 = arith.constant 0 : i32
    %9 = arith.cmpi eq, %arg2, %c0_i32_8 : i32
    %10 = arith.extui %9 : i1 to i32
    %c0_i32_9 = arith.constant 0 : i32
    %11 = arith.cmpi ne, %10, %c0_i32_9 : i32
    scf.if %11 {
      %c0_10 = arith.constant 0 : index
      %c0_11 = arith.constant 0 : index
      %12 = vector.load %arg7[%c0_10, %c0_11] : memref<16x128xf32, #tpu.memory_space<vmem>>, vector<16x128xf32>
      %c0_12 = arith.constant 0 : index
      %c0_13 = arith.constant 0 : index
      %13 = vector.load %arg5[%c0_12, %c0_13] : memref<1x128xf32, #tpu.memory_space<vmem>>, vector<1x128xf32>
      %14 = vector.broadcast %13 : vector<1x128xf32> to vector<16x128xf32>
      %15 = arith.addf %12, %14 : vector<16x128xf32>
      %c0_14 = arith.constant 0 : index
      %c0_15 = arith.constant 0 : index
      %16 = vector.load %arg6[%c0_14, %c0_15] : memref<16x128xf32, #tpu.memory_space<vmem>>, vector<16x128xf32>
      tpu.vector_store %arg6[%c0_14, %c0_15], %15 {strides = array<i32>} : memref<16x128xf32, #tpu.memory_space<vmem>>, vector<16x128xf32>,
    } else {
    }
    return
  }
  func.func @transform_0(%arg0: i32, %arg1: i32, %arg2: i32) -> (i32, i32) {
    %c0_i32 = arith.constant 0 : i32
    return %arg0, %arg2 : i32, i32
  }
  func.func @transform_1(%arg0: i32, %arg1: i32, %arg2: i32) -> (i32, i32) {
    %c0_i32 = arith.constant 0 : i32
    return %arg2, %arg1 : i32, i32
  }
  func.func @transform_2(%arg0: i32, %arg1: i32, %arg2: i32) -> (i32, i32) {
    %c0_i32 = arith.constant 0 : i32
    %c0_i32_0 = arith.constant 0 : i32
    return %c0_i32, %arg1 : i32, i32
  }
  func.func @transform_3(%arg0: i32, %arg1: i32, %arg2: i32) -> (i32, i32) {
    %c0_i32 = arith.constant 0 : i32
    return %arg0, %arg1 : i32, i32
  }
}

</mosaic_0001>

<bundles_post_ra>
// kernel: tpu_custom_call.1
= control target key start
LH: loop header
LB: loop body
LE: loop exit
PB: predicated region body
PF: predicated region fallthrough
CT: control target
= control target key end

     0   :  { %8 = vsyncpa [#allocation4], 0  ;;  %s999_s0 = inlined_call_operand.hbm [shape: f32[16,128], index: 0, kind: input, shape index: {}]   ;;  %s1000_s1 = inlined_call_operand.hbm [shape: f32[128,384], index: 1, kind: input, shape index: {}]   ;;  %s1001_s2 = inlined_call_operand.hbm [shape: f32[1,384], index: 2, kind: input, shape index: {}]   ;;  %s1002_s3 = inlined_call_operand.hbm [shape: f32[16,384], index: 3, kind: output, shape index: {}]  }
   0x1   :  { %9 = vsyncpa [#allocation7], 0 }
   0x2   :  { %11 = vsyncpa [#allocation7 + $0x1], 0 }
   0x3   :  { %12 = vsyncpa [#allocation5], 0 }
   0x4   :  { %14 = vsyncpa [#allocation5 + $0x1], 0  ;;  %s804_s12 = smov 0   ;;  %s806_s13 = smov 0  }
   0x5   :  { %s808_s14 = smov 0   ;;  %s810_s15 = smov 0  }
   0x6   :  { %s812_s16 = smov 0   ;;  %s814_s17 = smov 0  }
   0x7 LB: > { %s35_s18 = sadd.s32 1, %s771_s16  ;;  %s76_s19 = sadd.s32 1, %s763_s14  ;;  %s775_s17 = sphi %s814_s17, %s20_s17   ;;  %s771_s16 = sphi %s812_s16, %s1013_s16   ;;  %s767_s15 = sphi %s810_s15, %s1012_s15   ;;  %s763_s14 = sphi %s808_s14, %s1011_s14   ;;  %s759_s13 = sphi %s806_s13, %s1010_s13   ;;  %s755_s12 = sphi %s804_s12, %s1009_s12  }
   0x8   : > { %p37_p0 = scmp.ge.s32.totalorder %s35_s18, 3  ;;  %p83_p1 = scmp.ne.s32.totalorder %s763_s14, %s759_s13 }
   0x9   : > { %p84_p2 = scmp.eq.s32.totalorder %s775_s17, 0  ;;  %p540_p5 = scmp.lt.s32.totalorder %s775_s17, 3 }
   0xa   : > { %s1015_s18 = smov (%p37_p0, %s35_s18), 0  ;;  %s185_s22 = sand.u32 1, %s775_s17  }
   0xb   : > { %p844_p3 = por %p84_p2, %p83_p1  ;;  %s72_s21 = ssub.s32 %s771_s16, %s1015_s18 }
   0xc   : > { %p74_p4 = scmp.eq.s32.totalorder %s72_s21, 0  ;;  %s187_s23 = sand.u32 1, %s763_s14  }
   0xd   : > { %s488_s25 = sshll.u32 %s187_s23, 7  ;;  %s489_s26 = sshll.u32 %s771_s16, 3 }
   0xe   : > { %s854_s24 = scalar_select %p74_p4, %s763_s14, %s76_s19  }
   0xf   : > { %s196_s29 = scalar_lea.hbm %s1000_s1, %s489_s26  ;;  %s189_s30 = scalar_lea.vmem [#allocation6], %s488_s25 }
  0x10   : > { %s199_s4 = sshll.u32 %s189_s30, 4  ;;  %s197_s5 = sshll.u32 %s196_s29, 4  ;;  %s200_s4 = int_to_ptr.vmem [resolvable:$true] %s199_s4  ;;  %s198_s5 = int_to_ptr.hbm [resolvable:$true] %s197_s5 }
  0x11   : > { %p864_p6 = pnand %p540_p5, %p844_p3  ;;  %s868_s7 = scalar_lea.sflag [#allocation7], %s185_s22 }
  0x12   : > { %s777_s8 = smov 384   ;;  %s778_s9 = smov 128  }
  0x13   : > { %s779_s10 = smov 8   ;;  %s876_s11 = sadd.s32 4294967295, %s775_s17  }
  0x14   : > { %531 = dma.hbm_to_vmem [thread:$0]  (!%p864_p6), %s198_s5, 2048, %s200_s4, %s868_s7, %s777_s8, %s778_s9, %s779_s10  }
  0x15   : > { %s484_s19 = sadd.s32 4294967294, %s775_s17   ;;  %p89_p7 = scmp.ne.s32.totalorder %s759_s13, %s755_s12 }
  0x16   : > { %p90_p8 = scmp.eq.s32.totalorder %s876_s11, 0  ;;  %p141_p9 = scmp.eq.s32.totalorder %s876_s11, 2 }
  0x17   : > { %p147_p10 = scmp.eq.s32.totalorder %s484_s19, 2  ;;  %p485_p12 = scmp.ge.s32.totalorder %s775_s17, 1 }
  0x18   : > { %p885_p11 = por %p90_p8, %p89_p7  ;;  %p893_p13 = por %p141_p9, %p83_p1 }
  0x19   : > { %p897_p0 = por %p147_p10, %p89_p7  ;;  %p154_p2 = scmp.lt.s32.totalorder %s775_s17, 4 }
  0x1a   : > { %s169_s27 = sshll.u32 %s999_s0, 4  ;;  %s780_s29 = smov [#allocation3]   ;;  %s170_s27 = int_to_ptr.hbm [resolvable:$true] %s169_s27 }
  0x1b   : > { %p905_p3 = pnand %p485_p12, %p154_p2  ;;  %s171_s30 = sshll.u32 %s780_s29, 4  ;;  %s172_s30 = int_to_ptr.vmem [resolvable:$true] %s171_s30 }
  0x1c   : > { %s215_s8 = scalar_lea.hbm %s1001_s2, %s771_s16  ;;  %s212_s19 = scalar_lea.vmem [#allocation8], %s187_s23 }
  0x1d   : > { %p524_p1 = pneg %p905_p3  ;;  %s219_s25 = sshll.u32 %s212_s19, 4  ;;  %s220_s25 = int_to_ptr.vmem [resolvable:$true] %s219_s25 }
  0x1e   : > { %s217_s26 = sshll.u32 %s215_s8, 4  ;;  %228 = sbr.rel (%p905_p3) target bundleno = 206 (0xce), region = 32  ;;  %s218_s26 = int_to_ptr.hbm [resolvable:$true] %s217_s26 }
  0x1f   : > { %p525_p4 = pnand %p524_p1, %p90_p8 }
  0x20   : > { %534 = dma.hbm_to_vmem [thread:$0]  (!%p864_p6), %s218_s26, 16, %s220_s25, %s868_s7  }
  0x21   : > { %527 = dma.hbm_to_vmem [thread:$0]  (!%p525_p4), %s170_s27, 256, %s172_s30, [#allocation4], %s778_s9, %s778_s9, %s779_s10  }
  0x23   : > { %742 = dma.done.wait (%p90_p8), [#allocation4], 256  }
  0x24   : > { %744 = vsyncadd (%p90_p8), [#allocation4], 4294967040  ;;  %s235_s23 = sand.u32 1, %s876_s11   ;;  %s933_s29 = sand.u32 1, %s759_s13  }
  0x25   : > { %s492_s4 = sshll.u32 %s933_s29, 7  ;;  %s236_s9 = scalar_lea.sflag [#allocation7], %s235_s23 }
  0x26   : > { %s936_s6 = scalar_lea.vmem [#allocation6], %s492_s4 }
  0x27   : > { %746 = dma.done.wait (%p885_p11), %s236_s9, 2064  }
  0x28   : > { %748 = vsyncadd (%p885_p11), %s236_s9, 4294965232  ;;  %v304_v0 = vld [vmem:[%s936_s6 + $0x78] sm:$0xff]  ;;  %v303_v1 = vld [vmem:[%s936_s6 + $0x70] sm:$0xff]  ;;  %s248_s7 = scalar_lea.vmem [#allocation8], %s933_s29  ;;  %s493_s10 = sshll.u32 %s933_s29, 4 }
  0x29   : > { %305 = vmatpush.msra.mxu0 %v304_v0  ;;  %498 = vmatpush.msra.mxu1 %v304_v0  ;;  %v302_v2 = vld [vmem:[%s936_s6 + $0x68] sm:$0xff]  ;;  %v301_v3 = vld [vmem:[%s936_s6 + $0x60] sm:$0xff]  ;;  %v300_v4 = vld [vmem:[%s936_s6 + $0x58] sm:$0xff]  ;;  %s495_s11 = sshll.u32 %s767_s15, 3  ;;  %s275_s30 = scalar_lea.vmem [#allocation9], %s493_s10 }
  0x2a   : > { %v299_v5 = vld [vmem:[%s936_s6 + $0x50] sm:$0xff]  ;;  %v298_v6 = vld [vmem:[%s936_s6 + $0x48] sm:$0xff]  ;;  %v297_v7 = vld [vmem:[%s936_s6 + $0x40] sm:$0xff]  ;;  %s359_s28 = scalar_lea.hbm %s1002_s3, %s495_s11  ;;  %s360_s5 = sshll.u32 %s275_s30, 4  ;;  %s361_s5 = int_to_ptr.vmem [resolvable:$true] %s360_s5 }
  0x2b   : > { %306 = vmatpush.msra.mxu0 %v303_v1  ;;  %499 = vmatpush.msra.mxu1 %v303_v1  ;;  %v296_v8 = vld [vmem:[%s936_s6 + $0x38] sm:$0xff]  ;;  %v295_v9 = vld [vmem:[%s936_s6 + $0x30] sm:$0xff]  ;;  %v294_v10 = vld [vmem:[%s936_s6 + $0x28] sm:$0xff]  ;;  %s362_s8 = sshll.u32 %s359_s28, 4  ;;  %s346_s19 = scalar_lea.sflag [#allocation5], %s933_s29  ;;  %s363_s8 = int_to_ptr.hbm [resolvable:$true] %s362_s8 }
  0x2c   : > { %v293_v11 = vld [vmem:[%s936_s6 + $0x20] sm:$0xff]  ;;  %v292_v12 = vld [vmem:[%s936_s6 + $0x18] sm:$0xff]  ;;  %v291_v13 = vld [vmem:[%s936_s6 + $0x10] sm:$0xff]  ;;  %s703_s15 = sshra.s32 %s363_s8, 4  ;;  %s709_s4 = scalar_lea.hbm %s1002_s3, 48  ;;  %s704_s15 = int_to_ptr.hbm [resolvable:$true] %s703_s15 }
  0x2d   : > { %307 = vmatpush.msra.mxu0 %v302_v2  ;;  %500 = vmatpush.msra.mxu1 %v302_v2  ;;  %v290_v14 = vld [vmem:[%s936_s6 + $0x8] sm:$0xff]  ;;  %v289_v15 = vld [vmem:[%s936_s6] sm:$0xff]  ;;  %v287_v16 = vld [vmem:[#allocation3] sm:$0xff]  ;;  %s705_s25 = scalar_lea.hbm %s704_s15, 16  ;;  %p710_p8 = scmp.lt.s32.totalorder %s704_s15, %s1002_s3 }
  0x2e   : > { %v288_v17 = vld [vmem:[#allocation3 + $0x8] sm:$0xff]  ;;  %v598_v18 = vld [vmem:[%s248_s7] ss:$0 sm:$0xff]  ;;  %p706_p5 = scmp.ne.s32.totalorder %s704_s15, %s705_s25  ;;  %p711_p9 = scmp.lt.s32.totalorder %s709_s4, %s705_s25 }
  0x2f   : > { %308 = vmatpush.msra.mxu0 %v301_v3  ;;  %501 = vmatpush.msra.mxu1 %v301_v3 }
  0x30   : > { %p707_p6 = pnand %p706_p5, %p893_p13  ;;  %p712_p10 = por %p711_p9, %p710_p8 }
  0x31   : > { %309 = vmatpush.msra.mxu0 %v300_v4  ;;  %502 = vmatpush.msra.mxu1 %v300_v4 }
  0x32   : > { %p708_p7 = pneg %p707_p6 }
  0x33   : > { %310 = vmatpush.msra.mxu0 %v299_v5  ;;  %503 = vmatpush.msra.mxu1 %v299_v5 }
  0x34   : > { %p713_p11 = pnand %p712_p10, %p708_p7 }
  0x35   : > { %311 = vmatpush.msra.mxu0 %v298_v6  ;;  %504 = vmatpush.msra.mxu1 %v298_v6 }
  0x37   : > { %312 = vmatpush.msra.mxu0 %v297_v7  ;;  %505 = vmatpush.msra.mxu1 %v297_v7 }
  0x39   : > { %313 = vmatpush.msra.mxu0 %v296_v8  ;;  %506 = vmatpush.msra.mxu1 %v296_v8 }
  0x3b   : > { %314 = vmatpush.msra.mxu0 %v295_v9  ;;  %507 = vmatpush.msra.mxu1 %v295_v9 }
  0x3d   : > { %315 = vmatpush.msra.mxu0 %v294_v10  ;;  %508 = vmatpush.msra.mxu1 %v294_v10 }
  0x3f   : > { %316 = vmatpush.msra.mxu0 %v293_v11  ;;  %509 = vmatpush.msra.mxu1 %v293_v11 }
  0x41   : > { %317 = vmatpush.msra.mxu0 %v292_v12  ;;  %510 = vmatpush.msra.mxu1 %v292_v12 }
  0x43   : > { %318 = vmatpush.msra.mxu0 %v291_v13  ;;  %511 = vmatpush.msra.mxu1 %v291_v13 }
  0x45   : > { %319 = vmatpush.msra.mxu0 %v290_v14  ;;  %512 = vmatpush.msra.mxu1 %v290_v14 }
  0x47   : > { %320 = vmatpush.msra.mxu0 %v289_v15  ;;  %513 = vmatpush.msra.mxu1 %v289_v15 }
  0x48   : > { %321 = vmatmul.f32.vlgmr.msra.gmra.mxu0 %v287_v16  ;;  %324 = vmatmul.f32.vlgmr.msra.gmra.mxu1 %v288_v17 }
  0xc5   : > { %v322_v19 = vpop.f32.mrf.mxu0  ;;  %v325_v20 = vpop.f32.mrf.mxu1 }
  0xc6   : > { %v341_v21 = vadd.f32 %v598_v18, %v322_v19  ;;  %v342_v22 = vadd.f32 %v598_v18, %v325_v20 }
  0xc8   : > { %343 = vst [vmem:[%s275_s30] sm:$0xff] %v341_v21 }
  0xc9   : > { %344 = vst [vmem:[%s275_s30 + $0x8] sm:$0xff] %v342_v22 }
  0xca   : > { %716 = shalt.err (!%p713_p11)
}
  0xcb   : > { %s781_s29 = smov 128   ;;  %s782_s7 = smov 384  }
  0xcc   : > { %s783_s10 = smov 8  }
  0xcd   : > { %522 = dma.vmem_to_hbm [thread:$0]  (%p893_p13), %s361_s5, 256, %s363_s8, %s346_s19, %s781_s29, %s782_s7, %s783_s10  }
  0xce PF: > { %p542_p12 = scmp.ge.s32.totalorder %s775_s17, 2  ;;  %s377_s11 = sand.u32 1, %s755_s12  }
  0xcf   : > { %s378_s20 = scalar_lea.sflag [#allocation5], %s377_s11 }
  0xd0   : > { %p536_p2 = pnand %p542_p12, %p897_p0 }
  0xd2   : > { %p537_p3 = pneg %p536_p2 }
  0xd4   : > { %750 = dma.done.wait (%p537_p3), %s378_s20, 256  }
  0xd5   : > { %752 = vsyncadd (%p537_p3), %s378_s20, 4294967040  ;;  %s20_s17 = sadd.s32 1, %s775_s17   ;;  %s1009_s12 = smov %s759_s13 }
  0xd6   : > { %p17_p1 = scmp.ge.s32.totalorder %s20_s17, 5   ;;  %s1010_s13 = smov %s763_s14 }
  0xd7   : > { %s1011_s14 = smov %s854_s24  ;;  %s1012_s15 = smov %s771_s16 }
  0xd8   : > { %s1013_s16 = smov %s1015_s18  ;;  %19 = sbr.rel (!%p17_p1) target bundleno = 7 (0x7), region = 102 }
  0xdd   :  { %384 = vsyncpa [#allocation4], 1 }
  0xde   :  { %386 = vsyncpa [#allocation4 + $0x1], 1 }
  0xdf   :  { %387 = vsyncpa [#allocation7], 1 }
  0xe0   :  { %389 = vsyncpa [#allocation7 + $0x1], 1 }
  0xe1   :  { %390 = vsyncpa [#allocation5], 1 }
  0xe2   :  { %392 = vsyncpa [#allocation5 + $0x1], 1 }

</bundles_post_ra>
